<compile_context>
chip_gen: v7x
topology: tpu7x:2x2x1
jax: 0.10.0
libtpu: 0.0.40
codegen_flags: <defaults>
</compile_context>

<pallas_src>
import functools

import jax
import jax.numpy as jnp
from jax.experimental import pallas as pl
from jax.experimental.pallas import tpu as pltpu


def _detect_single_buffer():
    # pl.Buffered(1) single-buffers grid-invariant operands (halves their VMEM
    # footprint; matters most on v7x's 64 MiB VMEM).  Older builds do not
    # accept BlockSpec(pipeline_mode=...), so feature-detect it.
    try:
        mode = pl.Buffered(1)
        pl.BlockSpec((8, 128), lambda i: (0, 0), pipeline_mode=mode)
        return mode
    except Exception:
        return None


_SINGLE_BUFFER = _detect_single_buffer()


def _weight_spec(shape, index_map, single_buffer):
    """BlockSpec for a grid-invariant operand (optionally single-buffered)."""
    if single_buffer and _SINGLE_BUFFER is not None:
        return pl.BlockSpec(shape, index_map, pipeline_mode=_SINGLE_BUFFER)
    return pl.BlockSpec(shape, index_map)


def _elu_plus_one(x):
    # elu(x, alpha=1) + 1; exp argument clamped so the untaken select branch
    # cannot overflow.
    return jnp.where(x > 0, x + 1.0, jnp.exp(jnp.minimum(x, 0.0)))


# --------------------------------------------------------------------------
# Stage 1: per-batch template precompute (runs B times, NOT B * Ns/block_ns).
# Produces attn_w[b] = [ (V/Nt)·Kf^T ⊙ mask ;  ksum-row ⊙ mask ]  of shape
# [2C, C] so the main kernel gets numerator and per-head denominator from a
# single [2C, C] @ [C, bns] matmul.
# --------------------------------------------------------------------------
def _template_kv_kernel(t_ref, mask_ref, wkv_ref, attnw_ref):
    f32 = jnp.float32
    cd = wkv_ref.dtype                       # MXU dtype (bf16 perf / f32 check)
    C = mask_ref.shape[0]
    nt = t_ref.shape[2]
    inv_nt = 1.0 / float(nt)

    t_c = t_ref[0].astype(cd)                                       # [C, Nt]
    # fused k|v projection (channels-first: y^T = W @ x^T, no transposes)
    kv = jnp.dot(wkv_ref[...], t_c, preferred_element_type=f32)     # [2C, Nt]
    fk = _elu_plus_one(kv[:C])                                      # [C, Nt]
    vn = kv[C:] * inv_nt                                            # [C, Nt]

    # One NT-form matmul (contract the Nt axis of both operands, no explicit
    # transpose) gives both the KV matrix and the K-sum row:
    #   rows 0..C-1 : (V/Nt) Kf^T ; row C : 1^T Kf^T = sum_s Kf[:, s]
    vn1 = jnp.concatenate([vn, jnp.ones((1, nt), f32)], axis=0)     # [C+1, Nt]
    g = jnp.einsum("vn,kn->vk", vn1.astype(cd), fk.astype(cd),
                   preferred_element_type=f32)                      # [C+1, C]

    mask = mask_ref[...]                                            # [C, C] block-diag 0/1
    top = g[:C] * mask                                              # masked KV        [C, C]
    bot = g[C:] * mask                                              # per-head ksum    [C, C]
    attnw_ref[0] = jnp.concatenate([top, bot], axis=0).astype(attnw_ref.dtype)


# --------------------------------------------------------------------------
# Stage 2: main kernel over grid (B, Ns // block_ns), channels-first tiles.
# --------------------------------------------------------------------------
def _cross_lin_attn_kernel(s_ref, attnw_ref, wq_ref, wm_ref, w1_ref, w2_ref,
                           g1_ref, b1_ref, g2_ref, b2_ref, o_ref,
                           *, nt, eps_attn, eps_ln, approx_recip):
    f32 = jnp.float32
    cd = wq_ref.dtype
    C = wq_ref.shape[0]
    inv_nt = 1.0 / float(nt)

    s_c = s_ref[0].astype(cd)                                       # [C, bns]

    # q projection + feature map (search side)
    q = jnp.dot(wq_ref[...], s_c, preferred_element_type=f32)       # [C, bns]
    fq_c = _elu_plus_one(q).astype(cd)                              # single cast, reused

    # fused numerator + per-head denominator: one [2C, C] @ [C, bns] matmul
    nd = jnp.dot(attnw_ref[0], fq_c, preferred_element_type=f32)    # [2C, bns]
    # attn = num * Nt / (den + eps); the Nt factor is folded into the EUP reciprocal arg
    attn = nd[:C] * pl.reciprocal((nd[C:] + eps_attn) * inv_nt, approx=approx_recip)

    # merge projection
    msg = jnp.dot(wm_ref[...], attn.astype(cd), preferred_element_type=f32)  # [C, bns]

    def layernorm(x, g_ref, b_ref):          # normalize over channels (sublane axis)
        mu = jnp.mean(x, axis=0, keepdims=True)
        var = jnp.mean((x - mu) ** 2, axis=0, keepdims=True)
        return (x - mu) * jax.lax.rsqrt(var + eps_ln) * g_ref[...] + b_ref[...]

    msg = layernorm(msg, g1_ref, b1_ref)

    # MLP: single fused [2C,2C] @ [2C,bns] matmul on concat([s, msg])
    x2 = jnp.concatenate([s_c, msg.astype(cd)], axis=0)             # [2C, bns]
    h1 = jnp.maximum(jnp.dot(w1_ref[...], x2, preferred_element_type=f32), 0.0)
    msg2 = jnp.dot(w2_ref[...], h1.astype(cd), preferred_element_type=f32)    # [C, bns]
    msg2 = layernorm(msg2, g2_ref, b2_ref)

    # residual read late so the f32 input tile is live only here
    o_ref[0] = (s_ref[0] + msg2).astype(o_ref.dtype)


def _cross_lin_attn_impl(search_feat, template_feat, params, nhead, *,
                         compute_dtype, approx_recip, block_ns,
                         vmem_limit_bytes, single_buffer):
    B, C, Ns = search_feat.shape
    _, _, Nt = template_feat.shape
    assert C % nhead == 0, "d_model must be divisible by nhead"
    head_dim = C // nhead
    f32 = jnp.float32
    cd = compute_dtype

    s = search_feat.astype(f32)              # [B, C, Ns]  channels-first, as given
    t = template_feat.astype(f32)            # [B, C, Nt]

    # Weights stay in native PyTorch [out, in] layout (channels-first math).
    wq = params["wq"].astype(cd)                                               # [C, C]
    wm = params["wm"].astype(cd)                                               # [C, C]
    w1 = params["w1"].astype(cd)                                               # [2C, 2C]
    w2 = params["w2"].astype(cd)                                               # [C, 2C]
    wkv = jnp.concatenate([params["wk"], params["wv"]], axis=0).astype(cd)     # [2C, C]
    g1 = params["g1"].reshape(C, 1).astype(f32)
    b1 = params["b1"].reshape(C, 1).astype(f32)
    g2 = params["g2"].reshape(C, 1).astype(f32)
    b2 = params["b2"].reshape(C, 1).astype(f32)

    # Block-diagonal head mask, hoisted out of all hot paths.
    hid = jnp.arange(C, dtype=jnp.int32) // head_dim
    head_mask = (hid[:, None] == hid[None, :]).astype(f32)                     # [C, C]

    # ---- stage 1: per-batch template precompute ----
    attn_w = pl.pallas_call(
        _template_kv_kernel,
        out_shape=jax.ShapeDtypeStruct((B, 2 * C, C), cd),
        grid=(B,),
        in_specs=[
            pl.BlockSpec((1, C, Nt), lambda b: (b, 0, 0)),
            _weight_spec((C, C), lambda b: (0, 0), single_buffer),
            _weight_spec((2 * C, C), lambda b: (0, 0), single_buffer),
        ],
        out_specs=pl.BlockSpec((1, 2 * C, C), lambda b: (b, 0, 0)),
        compiler_params=pltpu.CompilerParams(
            dimension_semantics=("parallel",),
            vmem_limit_bytes=vmem_limit_bytes),
    )(t, head_mask, wkv)

    # ---- stage 2: main kernel over (B, Ns tiles) ----
    if block_ns is None:
        block_ns = Ns
        for cand in (512, 256, 128):       # lane dim must be a multiple of 128 (or full Ns)
            if Ns % cand == 0:
                block_ns = cand
                break
        # ensure >= 2 parallel grid steps so both v7x TensorCores get work at B == 1
        if B * (Ns // block_ns) < 2 and block_ns % 256 == 0:
            block_ns //= 2
    assert Ns % block_ns == 0, "Ns must be divisible by block_ns"
    assert block_ns == Ns or block_ns % 128 == 0, "block_ns must be lane-aligned"

    kernel = functools.partial(
        _cross_lin_attn_kernel,
        nt=Nt, eps_attn=1e-6, eps_ln=1e-5, approx_recip=approx_recip)

    out = pl.pallas_call(
        kernel,
        out_shape=jax.ShapeDtypeStruct((B, C, Ns), f32),
        grid=(B, Ns // block_ns),
        in_specs=[
            pl.BlockSpec((1, C, block_ns), lambda b, i: (b, 0, i)),            # search tile
            pl.BlockSpec((1, 2 * C, C), lambda b, i: (b, 0, 0)),               # per-batch attn weights
            _weight_spec((C, C), lambda b, i: (0, 0), single_buffer),          # wq
            _weight_spec((C, C), lambda b, i: (0, 0), single_buffer),          # wm
            _weight_spec((2 * C, 2 * C), lambda b, i: (0, 0), single_buffer),  # w1
            _weight_spec((C, 2 * C), lambda b, i: (0, 0), single_buffer),      # w2
            _weight_spec((C, 1), lambda b, i: (0, 0), single_buffer),          # norm1 gamma
            _weight_spec((C, 1), lambda b, i: (0, 0), single_buffer),          # norm1 beta
            _weight_spec((C, 1), lambda b, i: (0, 0), single_buffer),          # norm2 gamma
            _weight_spec((C, 1), lambda b, i: (0, 0), single_buffer),          # norm2 beta
        ],
        out_specs=pl.BlockSpec((1, C, block_ns), lambda b, i: (b, 0, i)),
        compiler_params=pltpu.CompilerParams(
            dimension_semantics=("parallel", "parallel"),
            vmem_limit_bytes=vmem_limit_bytes),
    )(s, attn_w, wq, wm, w1, w2, g1, b1, g2, b2)

    return out


def cross_lin_attn_forward(search_feat, template_feat, params, nhead, *,
                           compute_dtype=jnp.bfloat16, approx_recip=True,
                           block_ns=None, vmem_limit_bytes=32 * 1024 * 1024):
    """search_feat: [B, C, Ns], template_feat: [B, C, Nt] -> out: [B, C, Ns] (f32)."""
    kwargs = dict(compute_dtype=compute_dtype, approx_recip=approx_recip,
                  block_ns=block_ns, vmem_limit_bytes=vmem_limit_bytes)
    if _SINGLE_BUFFER is not None:
        try:
            return _cross_lin_attn_impl(search_feat, template_feat, params, nhead,
                                        single_buffer=True, **kwargs)
        except Exception:
            # Some builds accept BlockSpec(pipeline_mode=...) but reject it at
            # TPU lowering time; retry with plain double-buffered weight specs.
            pass
    return _cross_lin_attn_impl(search_feat, template_feat, params, nhead,
                                single_buffer=False, **kwargs)


def ref_forward(search_feat, template_feat, params, nhead):
    """Pure-JAX reference mirroring the PyTorch forward (for verification)."""
    B, C, _ = search_feat.shape
    D = C // nhead
    s = jnp.transpose(search_feat, (0, 2, 1))
    t = jnp.transpose(template_feat, (0, 2, 1))
    q = (s @ params["wq"].T).reshape(B, -1, nhead, D)
    k = (t @ params["wk"].T).reshape(B, -1, nhead, D)
    v = (t @ params["wv"].T).reshape(B, -1, nhead, D)
    fm = lambda x: jax.nn.elu(x) + 1.0
    Q, K = fm(q), fm(k)
    nt = v.shape[1]
    vals = v / nt
    KV = jnp.einsum('nshd,nshv->nhdv', K, vals)
    Z = 1.0 / (jnp.einsum('nlhd,nhd->nlh', Q, K.sum(axis=1)) + 1e-6)
    msg = jnp.einsum('nlhd,nhdv,nlh->nlhv', Q, KV, Z) * nt
    msg = msg.reshape(B, -1, C) @ params["wm"].T

    def ln(x, g, b):
        mu = x.mean(-1, keepdims=True)
        var = ((x - mu) ** 2).mean(-1, keepdims=True)
        return (x - mu) / jnp.sqrt(var + 1e-5) * g + b

    msg = ln(msg, params["g1"], params["b1"])
    h = jnp.concatenate([s, msg], axis=2) @ params["w1"].T
    h = jnp.maximum(h, 0.0)
    msg = ln(h @ params["w2"].T, params["g2"], params["b2"])
    return jnp.transpose(s + msg, (0, 2, 1))


if __name__ == "__main__":
    # small shapes consistent with the module (d_model divisible by nhead)
    B, C, NHEAD = 2, 32, 4
    NS, NT = 256, 32

    key = jax.random.PRNGKey(0)
    ks = jax.random.split(key, 8)

    def linear_w(k, out_f, in_f):
        bound = 1.0 / jnp.sqrt(in_f)
        return jax.random.uniform(k, (out_f, in_f), jnp.float32, -bound, bound)

    params = {
        "wq": linear_w(ks[0], C, C),
        "wk": linear_w(ks[1], C, C),
        "wv": linear_w(ks[2], C, C),
        "wm": linear_w(ks[3], C, C),
        "w1": linear_w(ks[4], 2 * C, 2 * C),
        "w2": linear_w(ks[5], C, 2 * C),
        # LayerNorm affine params (PyTorch default init: ones / zeros)
        "g1": jnp.ones((C,), jnp.float32),
        "b1": jnp.zeros((C,), jnp.float32),
        "g2": jnp.ones((C,), jnp.float32),
        "b2": jnp.zeros((C,), jnp.float32),
    }

    search_feat = jax.random.normal(ks[6], (B, C, NS), jnp.float32)
    template_feat = jax.random.normal(ks[7], (B, C, NT), jnp.float32)

    ref = ref_forward(search_feat, template_feat, params, NHEAD)

    # f32 path (f32 MXU operands, exact reciprocal): tight correctness check;
    # block_ns=128 exercises the multi-tile Ns grid.
    out_f32 = cross_lin_attn_forward(search_feat, template_feat, params, NHEAD,
                                     compute_dtype=jnp.float32, approx_recip=False,
                                     block_ns=128)
    out_f32 = jax.block_until_ready(out_f32)
    assert out_f32.shape == (B, C, NS)
    assert jnp.allclose(out_f32, ref, atol=1e-3, rtol=1e-3), "f32 kernel mismatch vs reference"

    # bf16 perf path (bf16 MXU operands, f32 accumulation, EUP approx reciprocal):
    # looser tolerance -- exact correctness is covered by the f32 path above.
    out_bf16 = cross_lin_attn_forward(search_feat, template_feat, params, NHEAD,
                                      compute_dtype=jnp.bfloat16, approx_recip=True)
    out_bf16 = jax.block_until_ready(out_bf16)
    assert out_bf16.shape == (B, C, NS)
    assert jnp.allclose(out_bf16, ref, atol=1e-1, rtol=1e-1), "bf16 kernel mismatch vs reference"

    print("KERNEL_OK")
</pallas_src>

<mosaic_0001>
module attributes {stable_mosaic.version = 11 : i64} {
  func.func @_template_kv_kernel(%arg0: i32, %arg1: memref<1x32x32xf32, #tpu.memory_space<vmem>>, %arg2: memref<32x32xf32, #tpu.memory_space<vmem>>, %arg3: memref<64x32xf32, #tpu.memory_space<vmem>>, %arg4: memref<1x64x32xf32, #tpu.memory_space<vmem>>) attributes {dimension_semantics = [#tpu.dimension_semantics<parallel>], iteration_bounds = array<i64: 2>, scalar_prefetch = 0 : i64, scratch_operands = 0 : i64, tpu.core_type = #tpu.core_type<tc>, window_params = [{transform_indices = @transform_0, window_bounds = array<i64: 1, 32, 32>}, {pipeline_mode = #tpu.pipeline_mode<synchronous>, transform_indices = @transform_1, window_bounds = array<i64: 32, 32>}, {pipeline_mode = #tpu.pipeline_mode<synchronous>, transform_indices = @transform_2, window_bounds = array<i64: 64, 32>}, {transform_indices = @transform_3, window_bounds = array<i64: 1, 64, 32>}]} {
    %c0 = arith.constant 0 : index
    %c0_0 = arith.constant 0 : index
    %c0_1 = arith.constant 0 : index
    %0 = vector.load %arg1[%c0, %c0_0, %c0_1] : memref<1x32x32xf32, #tpu.memory_space<vmem>>, vector<1x32x32xf32>
    %1 = vector.shape_cast %0 : vector<1x32x32xf32> to vector<32x32xf32>
    %c0_2 = arith.constant 0 : index
    %c0_3 = arith.constant 0 : index
    %2 = vector.load %arg3[%c0_2, %c0_3] : memref<64x32xf32, #tpu.memory_space<vmem>>, vector<64x32xf32>
    %cst = arith.constant dense<0.000000e+00> : vector<64x32xf32>
    %3 = tpu.matmul %2, %1, %cst {dimension_numbers = #tpu.dot_dimension_numbers<[1], [0], [0], [1], [0, 0, 1, 1], [], []>} : vector<64x32xf32>, vector<32x32xf32>, vector<64x32xf32> -> vector<64x32xf32>
    %4 = vector.extract_strided_slice %3 {offsets = [0, 0], sizes = [32, 32], strides = [1, 1]} : vector<64x32xf32> to vector<32x32xf32>
    %cst_4 = arith.constant 0.000000e+00 : f32
    %5 = vector.broadcast %cst_4 : f32 to vector<32x32xf32>
    %6 = arith.cmpf ogt, %4, %5 : vector<32x32xf32>
    %cst_5 = arith.constant 1.000000e+00 : f32
    %7 = vector.broadcast %cst_5 : f32 to vector<32x32xf32>
    %8 = arith.addf %4, %7 : vector<32x32xf32>
    %cst_6 = arith.constant 0.000000e+00 : f32
    %9 = vector.broadcast %cst_6 : f32 to vector<32x32xf32>
    %10 = arith.minimumf %4, %9 : vector<32x32xf32>
    %11 = math.exp %10 : vector<32x32xf32>
    %12 = arith.select %6, %8, %11 : vector<32x32xi1>, vector<32x32xf32>
    %13 = vector.extract_strided_slice %3 {offsets = [32, 0], sizes = [32, 32], strides = [1, 1]} : vector<64x32xf32> to vector<32x32xf32>
    %cst_7 = arith.constant 3.125000e-02 : f32
    %14 = vector.broadcast %cst_7 : f32 to vector<32x32xf32>
    %15 = arith.mulf %13, %14 : vector<32x32xf32>
    %cst_8 = arith.constant 1.000000e+00 : f32
    %16 = vector.broadcast %cst_8 : f32 to vector<1x32xf32>
    %17 = tpu.concatenate %15, %16 in 0 : vector<32x32xf32>, vector<1x32xf32> -> vector<33x32xf32>
    "tpu.trace_start"() <{level = 10 : i32, message = "vn,kn->vk"}> : () -> ()
    %cst_9 = arith.constant dense<0.000000e+00> : vector<33x32xf32>
    %18 = tpu.matmul %17, %12, %cst_9 {dimension_numbers = #tpu.dot_dimension_numbers<[1], [1], [0], [0], [0, 0, 1, 0], [], []>} : vector<33x32xf32>, vector<32x32xf32>, vector<33x32xf32> -> vector<33x32xf32>
    "tpu.trace_stop"() : () -> ()
    %c0_10 = arith.constant 0 : index
    %c0_11 = arith.constant 0 : index
    %19 = vector.load %arg2[%c0_10, %c0_11] : memref<32x32xf32, #tpu.memory_space<vmem>>, vector<32x32xf32>
    %20 = vector.extract_strided_slice %18 {offsets = [0, 0], sizes = [32, 32], strides = [1, 1]} : vector<33x32xf32> to vector<32x32xf32>
    %21 = arith.mulf %20, %19 : vector<32x32xf32>
    %22 = vector.extract_strided_slice %18 {offsets = [32, 0], sizes = [1, 32], strides = [1, 1]} : vector<33x32xf32> to vector<1x32xf32>
    %23 = vector.broadcast %22 : vector<1x32xf32> to vector<32x32xf32>
    %24 = arith.mulf %23, %19 : vector<32x32xf32>
    %25 = tpu.concatenate %21, %24 in 0 : vector<32x32xf32>, vector<32x32xf32> -> vector<64x32xf32>
    %c0_12 = arith.constant 0 : index
    %c0_13 = arith.constant 0 : index
    %c0_14 = arith.constant 0 : index
    %26 = vector.load %arg4[%c0_12, %c0_13, %c0_14] : memref<1x64x32xf32, #tpu.memory_space<vmem>>, vector<1x64x32xf32>
    %27 = vector.shape_cast %26 : vector<1x64x32xf32> to vector<64x32xf32>
    %28 = vector.shape_cast %25 : vector<64x32xf32> to vector<1x64x32xf32>
    tpu.vector_store %arg4[%c0_12, %c0_13, %c0_14], %28 {strides = array<i32>} : memref<1x64x32xf32, #tpu.memory_space<vmem>>, vector<1x64x32xf32>,
    return
  }
  func.func @transform_0(%arg0: i32) -> (i32, i32, i32) {
    %c0_i32 = arith.constant 0 : i32
    %c0_i32_0 = arith.constant 0 : i32
    %c0_i32_1 = arith.constant 0 : i32
    return %arg0, %c0_i32, %c0_i32_0 : i32, i32, i32
  }
  func.func @transform_1(%arg0: i32) -> (i32, i32) {
    %c0_i32 = arith.constant 0 : i32
    %c0_i32_0 = arith.constant 0 : i32
    %c0_i32_1 = arith.constant 0 : i32
    return %c0_i32, %c0_i32_0 : i32, i32
  }
  func.func @transform_2(%arg0: i32) -> (i32, i32) {
    %c0_i32 = arith.constant 0 : i32
    %c0_i32_0 = arith.constant 0 : i32
    %c0_i32_1 = arith.constant 0 : i32
    return %c0_i32, %c0_i32_0 : i32, i32
  }
  func.func @transform_3(%arg0: i32) -> (i32, i32, i32) {
    %c0_i32 = arith.constant 0 : i32
    %c0_i32_0 = arith.constant 0 : i32
    %c0_i32_1 = arith.constant 0 : i32
    return %arg0, %c0_i32, %c0_i32_0 : i32, i32, i32
  }
}

module attributes {stable_mosaic.version = 11 : i64} {
  func.func @_template_kv_kernel(%arg0: i32, %arg1: memref<1x32x32xf32, #tpu.memory_space<vmem>>, %arg2: memref<32x32xf32, #tpu.memory_space<vmem>>, %arg3: memref<64x32xf32, #tpu.memory_space<vmem>>, %arg4: memref<1x64x32xf32, #tpu.memory_space<vmem>>) attributes {dimension_semantics = [#tpu.dimension_semantics<parallel>], iteration_bounds = array<i64: 2>, scalar_prefetch = 0 : i64, scratch_operands = 0 : i64, tpu.core_type = #tpu.core_type<tc>, window_params = [{transform_indices = @transform_0, window_bounds = array<i64: 1, 32, 32>}, {pipeline_mode = #tpu.pipeline_mode<synchronous>, transform_indices = @transform_1, window_bounds = array<i64: 32, 32>}, {pipeline_mode = #tpu.pipeline_mode<synchronous>, transform_indices = @transform_2, window_bounds = array<i64: 64, 32>}, {transform_indices = @transform_3, window_bounds = array<i64: 1, 64, 32>}]} {
    %c0 = arith.constant 0 : index
    %c0_0 = arith.constant 0 : index
    %c0_1 = arith.constant 0 : index
    %0 = vector.load %arg1[%c0, %c0_0, %c0_1] : memref<1x32x32xf32, #tpu.memory_space<vmem>>, vector<1x32x32xf32>
    %1 = vector.shape_cast %0 : vector<1x32x32xf32> to vector<32x32xf32>
    %c0_2 = arith.constant 0 : index
    %c0_3 = arith.constant 0 : index
    %2 = vector.load %arg3[%c0_2, %c0_3] : memref<64x32xf32, #tpu.memory_space<vmem>>, vector<64x32xf32>
    %cst = arith.constant dense<0.000000e+00> : vector<64x32xf32>
    %3 = tpu.matmul %2, %1, %cst {dimension_numbers = #tpu.dot_dimension_numbers<[1], [0], [0], [1], [0, 0, 1, 1], [], []>} : vector<64x32xf32>, vector<32x32xf32>, vector<64x32xf32> -> vector<64x32xf32>
    %4 = vector.extract_strided_slice %3 {offsets = [0, 0], sizes = [32, 32], strides = [1, 1]} : vector<64x32xf32> to vector<32x32xf32>
    %cst_4 = arith.constant 0.000000e+00 : f32
    %5 = vector.broadcast %cst_4 : f32 to vector<32x32xf32>
    %6 = arith.cmpf ogt, %4, %5 : vector<32x32xf32>
    %cst_5 = arith.constant 1.000000e+00 : f32
    %7 = vector.broadcast %cst_5 : f32 to vector<32x32xf32>
    %8 = arith.addf %4, %7 : vector<32x32xf32>
    %cst_6 = arith.constant 0.000000e+00 : f32
    %9 = vector.broadcast %cst_6 : f32 to vector<32x32xf32>
    %10 = arith.minimumf %4, %9 : vector<32x32xf32>
    %11 = math.exp %10 : vector<32x32xf32>
    %12 = arith.select %6, %8, %11 : vector<32x32xi1>, vector<32x32xf32>
    %13 = vector.extract_strided_slice %3 {offsets = [32, 0], sizes = [32, 32], strides = [1, 1]} : vector<64x32xf32> to vector<32x32xf32>
    %cst_7 = arith.constant 3.125000e-02 : f32
    %14 = vector.broadcast %cst_7 : f32 to vector<32x32xf32>
    %15 = arith.mulf %13, %14 : vector<32x32xf32>
    %cst_8 = arith.constant 1.000000e+00 : f32
    %16 = vector.broadcast %cst_8 : f32 to vector<1x32xf32>
    %17 = tpu.concatenate %15, %16 in 0 : vector<32x32xf32>, vector<1x32xf32> -> vector<33x32xf32>
    "tpu.trace_start"() <{level = 10 : i32, message = "vn,kn->vk"}> : () -> ()
    %cst_9 = arith.constant dense<0.000000e+00> : vector<33x32xf32>
    %18 = tpu.matmul %17, %12, %cst_9 {dimension_numbers = #tpu.dot_dimension_numbers<[1], [1], [0], [0], [0, 0, 1, 0], [], []>} : vector<33x32xf32>, vector<32x32xf32>, vector<33x32xf32> -> vector<33x32xf32>
    "tpu.trace_stop"() : () -> ()
    %c0_10 = arith.constant 0 : index
    %c0_11 = arith.constant 0 : index
    %19 = vector.load %arg2[%c0_10, %c0_11] : memref<32x32xf32, #tpu.memory_space<vmem>>, vector<32x32xf32>
    %20 = vector.extract_strided_slice %18 {offsets = [0, 0], sizes = [32, 32], strides = [1, 1]} : vector<33x32xf32> to vector<32x32xf32>
    %21 = arith.mulf %20, %19 : vector<32x32xf32>
    %22 = vector.extract_strided_slice %18 {offsets = [32, 0], sizes = [1, 32], strides = [1, 1]} : vector<33x32xf32> to vector<1x32xf32>
    %23 = vector.broadcast %22 : vector<1x32xf32> to vector<32x32xf32>
    %24 = arith.mulf %23, %19 : vector<32x32xf32>
    %25 = tpu.concatenate %21, %24 in 0 : vector<32x32xf32>, vector<32x32xf32> -> vector<64x32xf32>
    %c0_12 = arith.constant 0 : index
    %c0_13 = arith.constant 0 : index
    %c0_14 = arith.constant 0 : index
    %26 = vector.load %arg4[%c0_12, %c0_13, %c0_14] : memref<1x64x32xf32, #tpu.memory_space<vmem>>, vector<1x64x32xf32>
    %27 = vector.shape_cast %26 : vector<1x64x32xf32> to vector<64x32xf32>
    %28 = vector.shape_cast %25 : vector<64x32xf32> to vector<1x64x32xf32>
    tpu.vector_store %arg4[%c0_12, %c0_13, %c0_14], %28 {strides = array<i32>} : memref<1x64x32xf32, #tpu.memory_space<vmem>>, vector<1x64x32xf32>,
    return
  }
  func.func @transform_0(%arg0: i32) -> (i32, i32, i32) {
    %c0_i32 = arith.constant 0 : i32
    %c0_i32_0 = arith.constant 0 : i32
    %c0_i32_1 = arith.constant 0 : i32
    return %arg0, %c0_i32, %c0_i32_0 : i32, i32, i32
  }
  func.func @transform_1(%arg0: i32) -> (i32, i32) {
    %c0_i32 = arith.constant 0 : i32
    %c0_i32_0 = arith.constant 0 : i32
    %c0_i32_1 = arith.constant 0 : i32
    return %c0_i32, %c0_i32_0 : i32, i32
  }
  func.func @transform_2(%arg0: i32) -> (i32, i32) {
    %c0_i32 = arith.constant 0 : i32
    %c0_i32_0 = arith.constant 0 : i32
    %c0_i32_1 = arith.constant 0 : i32
    return %c0_i32, %c0_i32_0 : i32, i32
  }
  func.func @transform_3(%arg0: i32) -> (i32, i32, i32) {
    %c0_i32 = arith.constant 0 : i32
    %c0_i32_0 = arith.constant 0 : i32
    %c0_i32_1 = arith.constant 0 : i32
    return %arg0, %c0_i32, %c0_i32_0 : i32, i32, i32
  }
}

</mosaic_0001>

<bundles_post_ra>
// kernel: tpu_custom_call.1
= control target key start
LH: loop header
LB: loop body
LE: loop exit
PB: predicated region body
PF: predicated region fallthrough
CT: control target
= control target key end

     0   :  { %s703_s12 = smov 0   ;;  %s810_s0 = inlined_call_operand.vmem [shape: f32[2,32,32], index: 0, kind: input, shape index: {}]   ;;  %s811_s1 = inlined_call_operand.vmem [shape: f32[32,32], index: 1, kind: input, shape index: {}]   ;;  %s812_s2 = inlined_call_operand.vmem [shape: f32[64,32], index: 2, kind: input, shape index: {}]   ;;  %s813_s3 = inlined_call_operand.vmem [shape: f32[2,64,32], index: 3, kind: output, shape index: {}]  }
   0x1 LB: > { %s537_s13 = sadd.s32 4294967295, %s677_s12   ;;  %p541_p0 = scmp.ge.s32.totalorder %s677_s12, 1  ;;  %s677_s12 = sphi %s703_s12, %s13_s12  }
   0x2   : > { %p137_p1 = scmp.lt.s32.totalorder %s677_s12, 3 }
   0x4   : > { %p138_p2 = pnand %p541_p0, %p137_p1 }
   0x5   : > { %p161_p3 = scmp.lt.s32.totalorder (!%p138_p2), %s537_s13, 1  ;;  %v175_v0 = vld [vmem:[%s812_s2] sm:$0xff] (!%p138_p2)  ;;  %vm183_vm0 = vcmask (!%p138_p2), 261120   ;;  %v176_v7 = vld [vmem:[%s812_s2 + $0x8] sm:$0xff] (!%p138_p2)  ;;  %v177_v8 = vld [vmem:[%s812_s2 + $0x10] sm:$0xff] (!%p138_p2)  ;;  %v679_v14 = vmov (!%p138_p2), 0.0|0.0   ;;  %v466_v60 = vlaneseq (!%p138_p2) }
   0x6   : > { %141 = sbr.rel (%p138_p2) target bundleno = 503 (0x1f7), region = 32  ;;  %596 = vmatprep.mubr.msk.f32.mxu0 (!%p138_p2), %vm183_vm0, %v175_v0  ;;  %v178_v9 = vld [vmem:[%s812_s2 + $0x18] sm:$0xff] (!%p138_p2)  ;;  %v179_v10 = vld [vmem:[%s812_s2 + $0x20] sm:$0xff] (!%p138_p2)  ;;  %v180_v11 = vld [vmem:[%s812_s2 + $0x28] sm:$0xff] (!%p138_p2)  ;;  %647 = vmatprep.subr.bf16.mxu1 (!%p138_p2), %v679_v14  ;;  %vm680_vm1 = vmmov (!%p138_p2), 0   ;;  %v681_v15 = vmov (!%p138_p2), 0.0  }
   0x7   : > { %v181_v12 = vld [vmem:[%s812_s2 + $0x30] sm:$0xff] (!%p138_p2)  ;;  %v182_v13 = vld [vmem:[%s812_s2 + $0x38] sm:$0xff] (!%p138_p2)  ;;  %619 = vmatprep.mubr.msk.f32.mxu1 (!%p138_p2), %vm680_vm1, %v681_v15  ;;  %vm753_vm4 = vmpackc.low (!%p138_p2), %vm183_vm0, %vm183_vm0  ;;  %v682_v51 = vmov (!%p138_p2), 1.0  }
   0x8   : > { %v458_v52 = vld [vmem:[%s811_s1] sm:$0xff] (!%p138_p2)  ;;  %v459_v53 = vld [vmem:[%s811_s1 + $0x8] sm:$0xff] (!%p138_p2)  ;;  %v460_v61 = vld [vmem:[%s811_s1 + $0x10] sm:$0xff] (!%p138_p2) }
   0xd   : > { %s817_s13 = smov (!%p161_p3, %s537_s13), 1 }
   0xe   : > { %s565_s16 = sshll.u32 %s817_s13, 5  ;;  %s566_s7 = sshll.u32 %s817_s13, 6 }
   0xf   : > { %s165_s19 = scalar_lea.vmem %s810_s0, %s565_s16  ;;  %s783_s16 = scalar_lea.vmem %s813_s3, %s566_s7 }
  0x10   : > { %v171_v1 = vld [vmem:[%s165_s19] sm:$0xff]  ;;  %v172_v2 = vld [vmem:[%s165_s19 + $0x8] sm:$0xff]  ;;  %v173_v3 = vld [vmem:[%s165_s19 + $0x10] sm:$0xff] }
  0x11   : > { %v631_v4 = vpack.c.bf16 %v172_v2, %v171_v1  ;;  %v174_v5 = vld [vmem:[%s165_s19 + $0x18] sm:$0xff]  ;;  %v467_v1 = vshrl.u32 %v466_v60, 7 }
  0x12   : > { %v635_v6 = vpack.c.bf16 %v174_v5, %v173_v3  ;;  %v461_v2 = vld [vmem:[%s811_s1 + $0x18] sm:$0xff] }
  0x13   : > { %632 = vmatprep.subr.bf16.mxu0 %v631_v4 }
  0x14   : > { %634 = vmatpush3.bf16.msra.mxu0 %v631_v4 }
  0x15   : > { %636 = vmatprep.subr.bf16.mxu0 %v635_v6 }
  0x18   : > { %638 = vmatpush3.bf16.msra.mxu0 %v635_v6  ;;  %v468_v6 = vsub.s32 0, %v467_v1 }
  0x19   : > { %639 = vmatprep.subr.bf16.mxu0 %v679_v14 }
  0x1b   : > { %597 = vmatmul.mubr.msk.f32.vlgmr.msra.gmra.mrb[0].mxu0 %vm183_vm0, %v176_v7 }
  0x1c   : > { %599 = vmatprep.mubr.msk.f32.mxu0 %vm183_vm0, %v177_v8 }
  0x1f   : > { %600 = vmatmul.mubr.msk.f32.gmra.mrb[2].mxu0 %vm183_vm0, %v178_v9 }
  0x20   : > { %602 = vmatprep.mubr.msk.f32.mxu0 %vm183_vm0, %v179_v10 }
  0x23   : > { %603 = vmatmul.mubr.msk.f32.gmra.mrb[4].mxu0 %vm183_vm0, %v180_v11 }
  0x24   : > { %605 = vmatprep.mubr.msk.f32.mxu0 %vm183_vm0, %v181_v12 }
  0x27   : > { %606 = vmatmul.mubr.msk.f32.gmra.mrb[6].mxu0 %vm183_vm0, %v182_v13 }
  0x28   : > { %616 = vmatprep.mubr.msk.f32.mxu0 %vm680_vm1, %v681_v15 }
  0xee   : > { %v598_v16 = vpop.f32.mrb[0].mxu0 }
  0xef   : > { %v322_v17 = vmin.f32 %v598_v16, 0.0  ;;  %v274_v18 = vpop.f32.mrb[1].mxu0  ;;  %v318_v32 = vadd.f32 1.0, %v598_v16  ;;  %vm314_vm2 = vcmp.gt.f32.partialorder %v598_v16, 0.0 }
  0xf0   : > { %v321_v19 = vmin.f32 %v274_v18, 0.0  ;;  %v317_v34 = vadd.f32 1.0, %v274_v18  ;;  %vm313_vm3 = vcmp.gt.f32.partialorder %v274_v18, 0.0 }
  0xf1   : > { %v327_v20 = vmul.f32 1.442695, %v322_v17 }
  0xf2   : > { %v325_v21 = vmul.f32 1.442695, %v321_v19  ;;  %v601_v22 = vpop.f32.mrb[2].mxu0 }
  0xf3   : > { %663 = vpow2.f32 %v327_v20  ;;  %v324_v23 = vmin.f32 %v601_v22, 0.0  ;;  %v284_v24 = vpop.f32.mrb[3].mxu0  ;;  %v320_v40 = vadd.f32 1.0, %v601_v22  ;;  %vm316_vm5 = vcmp.gt.f32.partialorder %v601_v22, 0.0 }
  0xf4   : > { %665 = vpow2.f32 %v325_v21  ;;  %v323_v25 = vmin.f32 %v284_v24, 0.0  ;;  %v319_v42 = vadd.f32 1.0, %v284_v24  ;;  %vm315_vm6 = vcmp.gt.f32.partialorder %v284_v24, 0.0 }
  0xf5   : > { %v331_v26 = vmul.f32 1.442695, %v324_v23 }
  0xf6   : > { %v329_v27 = vmul.f32 1.442695, %v323_v25  ;;  %v604_v28 = vpop.f32.mrb[4].mxu0 }
  0xf7   : > { %667 = vpow2.f32 %v331_v26  ;;  %v294_v29 = vpop.f32.mrb[5].mxu0  ;;  %v338_v47 = vmul.f32 0.03125, %v604_v28 }
  0xf8   : > { %669 = vpow2.f32 %v329_v27  ;;  %v337_v48 = vmul.f32 0.03125, %v294_v29 }
  0xfa   : > { %v607_v30 = vpop.f32.mrb[6].mxu0 }
  0xfb   : > { %v304_v31 = vpop.f32.mrb[7].mxu0  ;;  %v340_v50 = vmul.f32 0.03125, %v607_v30 }
  0xfc   : > { %v339_v49 = vmul.f32 0.03125, %v304_v31 }
  0xfd   : > { %v664_v33 = vpop.eup %663 }
  0xfe   : > { %v666_v35 = vpop.eup %665  ;;  %v334_v36 = vsel %vm314_vm2, %v318_v32, %v664_v33 }
  0xff   : > { %v333_v37 = vsel %vm313_vm3, %v317_v34, %v666_v35 }
 0x100   : > { %v640_v39 = vpack.c.bf16 %v334_v36, %v333_v37 }
 0x101   : > { %v668_v41 = vpop.eup %667 }
 0x102   : > { %v670_v43 = vpop.eup %669  ;;  %v336_v44 = vsel %vm316_vm5, %v320_v40, %v668_v41  ;;  %642 = vmatpush3.bf16.xpose.msk.msra.mxu0 %vm753_vm4, %v640_v39  ;;  %649 = vmatpush3.bf16.xpose.msk.msra.mxu1 %vm753_vm4, %v640_v39 }
 0x103   : > { %v335_v45 = vsel %vm315_vm6, %v319_v42, %v670_v43  ;;  %643 = vmatprep.subr.bf16.mxu0 %v679_v14  ;;  %648 = vmatprep.subr.bf16.mxu1 %v679_v14 }
 0x104   : > { %v644_v46 = vpack.c.bf16 %v336_v44, %v335_v45 }
 0x10a   : > { %646 = vmatpush3.bf16.xpose.msk.msra.mxu0 %vm753_vm4, %v644_v46  ;;  %650 = vmatpush3.bf16.xpose.msk.msra.mxu1 %vm753_vm4, %v644_v46 }
 0x111   : > { %617 = vmatmul.mubr.msk.f32.vlgmr.msra.gmra.mrb[8].mxu0 %vm183_vm0, %v337_v48  ;;  %620 = vmatmul.mubr.msk.f32.vlgmr.msra.gmra.mrb[0].mxu1 %vm183_vm0, %v338_v47 }
 0x112   : > { %622 = vmatprep.mubr.msk.f32.mxu1 %vm680_vm1, %v681_v15 }
 0x115   : > { %623 = vmatmul.mubr.msk.f32.gmra.mrb[2].mxu1 %vm183_vm0, %v339_v49 }
 0x116   : > { %625 = vmatprep.mubr.msk.f32.mxu1 %vm680_vm1, %v681_v15 }
 0x119   : > { %626 = vmatmul.mubr.msk.f32.gmra.mrb[4].mxu1 %vm183_vm0, %v340_v50 }
 0x11a   : > { %628 = vmatprep.mubr.msk.f32.mxu1 %vm680_vm1, %v681_v15 }
 0x11d   : > { %629 = vmatmul.mubr.msk.f32.gmra.mrb[6].mxu1 %vm183_vm0, %v682_v51 }
 0x1e4   : > { %v434_v54 = vpop.f32.mrb[8].mxu0  ;;  %v439_v55 = vpop.f32.mrb[0].mxu1 }
 0x1e5   : > { %v462_v56 = vmul.f32 %v458_v52, %v434_v54  ;;  %v463_v57 = vmul.f32 %v459_v53, %v439_v55  ;;  %v618_v58 = vpop.f32.mrb[9].mxu0  ;;  %v621_v59 = vpop.f32.mrb[1].mxu1 }
 0x1e7   : > { %474 = vst.msk [vmem:[%s783_s16] sm:$0xff] %vm183_vm0, %v462_v56  ;;  %475 = vst.msk [vmem:[%s783_s16 + $0x8] sm:$0xff] %vm183_vm0, %v463_v57 }
 0x1e8   : > { %v444_v62 = vpop.f32.mrb[2].mxu1 }
 0x1e9   : > { %v464_v63 = vmul.f32 %v460_v61, %v444_v62  ;;  %v624_v0 = vpop.f32.mrb[3].mxu1 }
 0x1eb   : > { %476 = vst.msk [vmem:[%s783_s16 + $0x10] sm:$0xff] %vm183_vm0, %v464_v63 }
 0x1ec   : > { %v449_v3 = vpop.f32.mrb[4].mxu1 }
 0x1ed   : > { %v465_v4 = vmul.f32 %v461_v2, %v449_v3  ;;  %v627_v5 = vpop.f32.mrb[5].mxu1 }
 0x1ef   : > { %477 = vst.msk [vmem:[%s783_s16 + $0x18] sm:$0xff] %vm183_vm0, %v465_v4 }
 0x1f0   : > { %v454_v7 = vpop.f32.mrb[6].mxu1 }
 0x1f1   : > { %v469_v8 = vrot.slane %v454_v7, %v468_v6  ;;  %v630_v9 = vpop.f32.mrb[7].mxu1 }
 0x1f3   : > { %v470_v10 = vmul.f32 %v469_v8, %v458_v52  ;;  %v471_v11 = vmul.f32 %v469_v8, %v459_v53  ;;  %v472_v12 = vmul.f32 %v469_v8, %v460_v61  ;;  %v473_v13 = vmul.f32 %v469_v8, %v461_v2 }
 0x1f5   : > { %478 = vst.msk [vmem:[%s783_s16 + $0x20] sm:$0xff] %vm183_vm0, %v470_v10  ;;  %479 = vst.msk [vmem:[%s783_s16 + $0x28] sm:$0xff] %vm183_vm0, %v471_v11 }
 0x1f6   : > { %480 = vst.msk [vmem:[%s783_s16 + $0x30] sm:$0xff] %vm183_vm0, %v472_v12  ;;  %481 = vst.msk [vmem:[%s783_s16 + $0x38] sm:$0xff] %vm183_vm0, %v473_v13 }
 0x1f7 PF: > { %s13_s12 = sadd.s32 1, %s677_s12  }
 0x1f8   : > { %p10_p4 = scmp.ge.s32.totalorder %s13_s12, 4  }
 0x1fa   :  { %12 = sbr.rel (!%p10_p4) target bundleno = 1 (0x1), region = 62 }

// kernel: tpu_custom_call.1
= control target key start
LH: loop header
LB: loop body
LE: loop exit
PB: predicated region body
PF: predicated region fallthrough
CT: control target
= control target key end

     0   :  { %s703_s12 = smov 0   ;;  %s810_s0 = inlined_call_operand.vmem [shape: f32[2,32,32], index: 0, kind: input, shape index: {}]   ;;  %s811_s1 = inlined_call_operand.vmem [shape: f32[32,32], index: 1, kind: input, shape index: {}]   ;;  %s812_s2 = inlined_call_operand.vmem [shape: f32[64,32], index: 2, kind: input, shape index: {}]   ;;  %s813_s3 = inlined_call_operand.vmem [shape: f32[2,64,32], index: 3, kind: output, shape index: {}]  }
   0x1 LB: > { %s537_s13 = sadd.s32 4294967295, %s677_s12   ;;  %p541_p0 = scmp.ge.s32.totalorder %s677_s12, 1  ;;  %s677_s12 = sphi %s703_s12, %s13_s12  }
   0x2   : > { %p137_p1 = scmp.lt.s32.totalorder %s677_s12, 3 }
   0x4   : > { %p138_p2 = pnand %p541_p0, %p137_p1 }
   0x5   : > { %p161_p3 = scmp.lt.s32.totalorder (!%p138_p2), %s537_s13, 1  ;;  %v175_v0 = vld [vmem:[%s812_s2] sm:$0xff] (!%p138_p2)  ;;  %vm183_vm0 = vcmask (!%p138_p2), 261120   ;;  %v176_v7 = vld [vmem:[%s812_s2 + $0x8] sm:$0xff] (!%p138_p2)  ;;  %v177_v8 = vld [vmem:[%s812_s2 + $0x10] sm:$0xff] (!%p138_p2)  ;;  %v679_v14 = vmov (!%p138_p2), 0.0|0.0   ;;  %v466_v60 = vlaneseq (!%p138_p2) }
   0x6   : > { %141 = sbr.rel (%p138_p2) target bundleno = 503 (0x1f7), region = 32  ;;  %596 = vmatprep.mubr.msk.f32.mxu0 (!%p138_p2), %vm183_vm0, %v175_v0  ;;  %v178_v9 = vld [vmem:[%s812_s2 + $0x18] sm:$0xff] (!%p138_p2)  ;;  %v179_v10 = vld [vmem:[%s812_s2 + $0x20] sm:$0xff] (!%p138_p2)  ;;  %v180_v11 = vld [vmem:[%s812_s2 + $0x28] sm:$0xff] (!%p138_p2)  ;;  %647 = vmatprep.subr.bf16.mxu1 (!%p138_p2), %v679_v14  ;;  %vm680_vm1 = vmmov (!%p138_p2), 0   ;;  %v681_v15 = vmov (!%p138_p2), 0.0  }
   0x7   : > { %v181_v12 = vld [vmem:[%s812_s2 + $0x30] sm:$0xff] (!%p138_p2)  ;;  %v182_v13 = vld [vmem:[%s812_s2 + $0x38] sm:$0xff] (!%p138_p2)  ;;  %619 = vmatprep.mubr.msk.f32.mxu1 (!%p138_p2), %vm680_vm1, %v681_v15  ;;  %vm753_vm4 = vmpackc.low (!%p138_p2), %vm183_vm0, %vm183_vm0  ;;  %v682_v51 = vmov (!%p138_p2), 1.0  }
   0x8   : > { %v458_v52 = vld [vmem:[%s811_s1] sm:$0xff] (!%p138_p2)  ;;  %v459_v53 = vld [vmem:[%s811_s1 + $0x8] sm:$0xff] (!%p138_p2)  ;;  %v460_v61 = vld [vmem:[%s811_s1 + $0x10] sm:$0xff] (!%p138_p2) }
   0xd   : > { %s817_s13 = smov (!%p161_p3, %s537_s13), 1 }
   0xe   : > { %s565_s16 = sshll.u32 %s817_s13, 5  ;;  %s566_s7 = sshll.u32 %s817_s13, 6 }
   0xf   : > { %s165_s19 = scalar_lea.vmem %s810_s0, %s565_s16  ;;  %s783_s16 = scalar_lea.vmem %s813_s3, %s566_s7 }
  0x10   : > { %v171_v1 = vld [vmem:[%s165_s19] sm:$0xff]  ;;  %v172_v2 = vld [vmem:[%s165_s19 + $0x8] sm:$0xff]  ;;  %v173_v3 = vld [vmem:[%s165_s19 + $0x10] sm:$0xff] }
  0x11   : > { %v631_v4 = vpack.c.bf16 %v172_v2, %v171_v1  ;;  %v174_v5 = vld [vmem:[%s165_s19 + $0x18] sm:$0xff]  ;;  %v467_v1 = vshrl.u32 %v466_v60, 7 }
  0x12   : > { %v635_v6 = vpack.c.bf16 %v174_v5, %v173_v3  ;;  %v461_v2 = vld [vmem:[%s811_s1 + $0x18] sm:$0xff] }
  0x13   : > { %632 = vmatprep.subr.bf16.mxu0 %v631_v4 }
  0x14   : > { %634 = vmatpush3.bf16.msra.mxu0 %v631_v4 }
  0x15   : > { %636 = vmatprep.subr.bf16.mxu0 %v635_v6 }
  0x18   : > { %638 = vmatpush3.bf16.msra.mxu0 %v635_v6  ;;  %v468_v6 = vsub.s32 0, %v467_v1 }
  0x19   : > { %639 = vmatprep.subr.bf16.mxu0 %v679_v14 }
  0x1b   : > { %597 = vmatmul.mubr.msk.f32.vlgmr.msra.gmra.mrb[0].mxu0 %vm183_vm0, %v176_v7 }
  0x1c   : > { %599 = vmatprep.mubr.msk.f32.mxu0 %vm183_vm0, %v177_v8 }
  0x1f   : > { %600 = vmatmul.mubr.msk.f32.gmra.mrb[2].mxu0 %vm183_vm0, %v178_v9 }
  0x20   : > { %602 = vmatprep.mubr.msk.f32.mxu0 %vm183_vm0, %v179_v10 }
  0x23   : > { %603 = vmatmul.mubr.msk.f32.gmra.mrb[4].mxu0 %vm183_vm0, %v180_v11 }
  0x24   : > { %605 = vmatprep.mubr.msk.f32.mxu0 %vm183_vm0, %v181_v12 }
  0x27   : > { %606 = vmatmul.mubr.msk.f32.gmra.mrb[6].mxu0 %vm183_vm0, %v182_v13 }
  0x28   : > { %616 = vmatprep.mubr.msk.f32.mxu0 %vm680_vm1, %v681_v15 }
  0xee   : > { %v598_v16 = vpop.f32.mrb[0].mxu0 }
  0xef   : > { %v322_v17 = vmin.f32 %v598_v16, 0.0  ;;  %v274_v18 = vpop.f32.mrb[1].mxu0  ;;  %v318_v32 = vadd.f32 1.0, %v598_v16  ;;  %vm314_vm2 = vcmp.gt.f32.partialorder %v598_v16, 0.0 }
  0xf0   : > { %v321_v19 = vmin.f32 %v274_v18, 0.0  ;;  %v317_v34 = vadd.f32 1.0, %v274_v18  ;;  %vm313_vm3 = vcmp.gt.f32.partialorder %v274_v18, 0.0 }
  0xf1   : > { %v327_v20 = vmul.f32 1.442695, %v322_v17 }
  0xf2   : > { %v325_v21 = vmul.f32 1.442695, %v321_v19  ;;  %v601_v22 = vpop.f32.mrb[2].mxu0 }
  0xf3   : > { %663 = vpow2.f32 %v327_v20  ;;  %v324_v23 = vmin.f32 %v601_v22, 0.0  ;;  %v284_v24 = vpop.f32.mrb[3].mxu0  ;;  %v320_v40 = vadd.f32 1.0, %v601_v22  ;;  %vm316_vm5 = vcmp.gt.f32.partialorder %v601_v22, 0.0 }
  0xf4   : > { %665 = vpow2.f32 %v325_v21  ;;  %v323_v25 = vmin.f32 %v284_v24, 0.0  ;;  %v319_v42 = vadd.f32 1.0, %v284_v24  ;;  %vm315_vm6 = vcmp.gt.f32.partialorder %v284_v24, 0.0 }
  0xf5   : > { %v331_v26 = vmul.f32 1.442695, %v324_v23 }
  0xf6   : > { %v329_v27 = vmul.f32 1.442695, %v323_v25  ;;  %v604_v28 = vpop.f32.mrb[4].mxu0 }
  0xf7   : > { %667 = vpow2.f32 %v331_v26  ;;  %v294_v29 = vpop.f32.mrb[5].mxu0  ;;  %v338_v47 = vmul.f32 0.03125, %v604_v28 }
  0xf8   : > { %669 = vpow2.f32 %v329_v27  ;;  %v337_v48 = vmul.f32 0.03125, %v294_v29 }
  0xfa   : > { %v607_v30 = vpop.f32.mrb[6].mxu0 }
  0xfb   : > { %v304_v31 = vpop.f32.mrb[7].mxu0  ;;  %v340_v50 = vmul.f32 0.03125, %v607_v30 }
  0xfc   : > { %v339_v49 = vmul.f32 0.03125, %v304_v31 }
  0xfd   : > { %v664_v33 = vpop.eup %663 }
  0xfe   : > { %v666_v35 = vpop.eup %665  ;;  %v334_v36 = vsel %vm314_vm2, %v318_v32, %v664_v33 }
  0xff   : > { %v333_v37 = vsel %vm313_vm3, %v317_v34, %v666_v35 }
 0x100   : > { %v640_v39 = vpack.c.bf16 %v334_v36, %v333_v37 }
 0x101   : > { %v668_v41 = vpop.eup %667 }
 0x102   : > { %v670_v43 = vpop.eup %669  ;;  %v336_v44 = vsel %vm316_vm5, %v320_v40, %v668_v41  ;;  %642 = vmatpush3.bf16.xpose.msk.msra.mxu0 %vm753_vm4, %v640_v39  ;;  %649 = vmatpush3.bf16.xpose.msk.msra.mxu1 %vm753_vm4, %v640_v39 }
 0x103   : > { %v335_v45 = vsel %vm315_vm6, %v319_v42, %v670_v43  ;;  %643 = vmatprep.subr.bf16.mxu0 %v679_v14  ;;  %648 = vmatprep.subr.bf16.mxu1 %v679_v14 }
 0x104   : > { %v644_v46 = vpack.c.bf16 %v336_v44, %v335_v45 }
 0x10a   : > { %646 = vmatpush3.bf16.xpose.msk.msra.mxu0 %vm753_vm4, %v644_v46  ;;  %650 = vmatpush3.bf16.xpose.msk.msra.mxu1 %vm753_vm4, %v644_v46 }
 0x111   : > { %617 = vmatmul.mubr.msk.f32.vlgmr.msra.gmra.mrb[8].mxu0 %vm183_vm0, %v337_v48  ;;  %620 = vmatmul.mubr.msk.f32.vlgmr.msra.gmra.mrb[0].mxu1 %vm183_vm0, %v338_v47 }
 0x112   : > { %622 = vmatprep.mubr.msk.f32.mxu1 %vm680_vm1, %v681_v15 }
 0x115   : > { %623 = vmatmul.mubr.msk.f32.gmra.mrb[2].mxu1 %vm183_vm0, %v339_v49 }
 0x116   : > { %625 = vmatprep.mubr.msk.f32.mxu1 %vm680_vm1, %v681_v15 }
 0x119   : > { %626 = vmatmul.mubr.msk.f32.gmra.mrb[4].mxu1 %vm183_vm0, %v340_v50 }
 0x11a   : > { %628 = vmatprep.mubr.msk.f32.mxu1 %vm680_vm1, %v681_v15 }
 0x11d   : > { %629 = vmatmul.mubr.msk.f32.gmra.mrb[6].mxu1 %vm183_vm0, %v682_v51 }
 0x1e4   : > { %v434_v54 = vpop.f32.mrb[8].mxu0  ;;  %v439_v55 = vpop.f32.mrb[0].mxu1 }
 0x1e5   : > { %v462_v56 = vmul.f32 %v458_v52, %v434_v54  ;;  %v463_v57 = vmul.f32 %v459_v53, %v439_v55  ;;  %v618_v58 = vpop.f32.mrb[9].mxu0  ;;  %v621_v59 = vpop.f32.mrb[1].mxu1 }
 0x1e7   : > { %474 = vst.msk [vmem:[%s783_s16] sm:$0xff] %vm183_vm0, %v462_v56  ;;  %475 = vst.msk [vmem:[%s783_s16 + $0x8] sm:$0xff] %vm183_vm0, %v463_v57 }
 0x1e8   : > { %v444_v62 = vpop.f32.mrb[2].mxu1 }
 0x1e9   : > { %v464_v63 = vmul.f32 %v460_v61, %v444_v62  ;;  %v624_v0 = vpop.f32.mrb[3].mxu1 }
 0x1eb   : > { %476 = vst.msk [vmem:[%s783_s16 + $0x10] sm:$0xff] %vm183_vm0, %v464_v63 }
 0x1ec   : > { %v449_v3 = vpop.f32.mrb[4].mxu1 }
 0x1ed   : > { %v465_v4 = vmul.f32 %v461_v2, %v449_v3  ;;  %v627_v5 = vpop.f32.mrb[5].mxu1 }
 0x1ef   : > { %477 = vst.msk [vmem:[%s783_s16 + $0x18] sm:$0xff] %vm183_vm0, %v465_v4 }
 0x1f0   : > { %v454_v7 = vpop.f32.mrb[6].mxu1 }
 0x1f1   : > { %v469_v8 = vrot.slane %v454_v7, %v468_v6  ;;  %v630_v9 = vpop.f32.mrb[7].mxu1 }
 0x1f3   : > { %v470_v10 = vmul.f32 %v469_v8, %v458_v52  ;;  %v471_v11 = vmul.f32 %v469_v8, %v459_v53  ;;  %v472_v12 = vmul.f32 %v469_v8, %v460_v61  ;;  %v473_v13 = vmul.f32 %v469_v8, %v461_v2 }
 0x1f5   : > { %478 = vst.msk [vmem:[%s783_s16 + $0x20] sm:$0xff] %vm183_vm0, %v470_v10  ;;  %479 = vst.msk [vmem:[%s783_s16 + $0x28] sm:$0xff] %vm183_vm0, %v471_v11 }
 0x1f6   : > { %480 = vst.msk [vmem:[%s783_s16 + $0x30] sm:$0xff] %vm183_vm0, %v472_v12  ;;  %481 = vst.msk [vmem:[%s783_s16 + $0x38] sm:$0xff] %vm183_vm0, %v473_v13 }
 0x1f7 PF: > { %s13_s12 = sadd.s32 1, %s677_s12  }
 0x1f8   : > { %p10_p4 = scmp.ge.s32.totalorder %s13_s12, 4  }
 0x1fa   :  { %12 = sbr.rel (!%p10_p4) target bundleno = 1 (0x1), region = 62 }

</bundles_post_ra>
